<compile_context>
chip_gen: v5e
topology: v5e:2x2
jax: 0.10.0
libtpu: 0.0.40
codegen_flags: <defaults>
</compile_context>

<pallas_src>
import jax
import jax.numpy as jnp
from jax import lax
from jax.experimental import pallas as pl
from jax.experimental.pallas import tpu as pltpu

_EPS = 1e-12   # torch F.normalize default eps
_SCALE = 30.0  # self.s in the torch module


def _normed_linear_kernel(x_ref, w_ref, inv_wn_ref, o_ref, acc_ref, ssx_ref):
    k = pl.program_id(2)

    @pl.when(k == 0)
    def _():
        acc_ref[...] = jnp.zeros_like(acc_ref)
        ssx_ref[...] = jnp.zeros_like(ssx_ref)

    # Raw-dtype tiles go straight to the MXU; accumulate in f32.
    x = x_ref[...]
    acc_ref[...] += jnp.dot(x, w_ref[...], preferred_element_type=jnp.float32)

    # Row sum-of-squares comes for free while the x tile is resident (f32 reduce).
    xf = x.astype(jnp.float32)
    ssx_ref[...] += jnp.sum(xf * xf, axis=1, keepdims=True)

    @pl.when(k == pl.num_programs(2) - 1)
    def _():
        # max(||x||, eps) == sqrt(max(ss, eps^2)) for ss >= 0  ->  single EUP rsqrt.
        inv_x = lax.rsqrt(jnp.maximum(ssx_ref[...], _EPS * _EPS))  # (tm, 1)
        o_ref[...] = (
            _SCALE * acc_ref[...] * inv_x * inv_wn_ref[...]
        ).astype(o_ref.dtype)


def _round_up(v, m):
    return (v + m - 1) // m * m


def normed_linear(x, weight, *, tm=256, tn=256, tk=512):
    """x: [N, in_features], weight: [in_features, out_features] -> [N, out_features]."""
    n, k_dim = x.shape
    k_w, m_out = weight.shape
    assert k_dim == k_w
    out_dtype = x.dtype

    # Inverse column norms of W: tiny one-shot XLA reduction (K-independent of tiling).
    w_f32 = weight.astype(jnp.float32)
    inv_wn = lax.rsqrt(
        jnp.maximum(jnp.sum(w_f32 * w_f32, axis=0, keepdims=True), _EPS * _EPS)
    )  # (1, out_features), f32

    # Clamp tiles to the (padded) problem size; keep sublane/lane alignment.
    tm = min(tm, _round_up(n, 8))        # sublane multiple (f32); also fine for bf16 demo sizes
    tn = min(tn, _round_up(m_out, 128))  # lane-dense output tiles
    tk = min(tk, _round_up(k_dim, 128))

    n_p = _round_up(n, tm)
    m_p = _round_up(m_out, tn)
    k_p = _round_up(k_dim, tk)

    # Zero padding is semantically inert: padded K contributes nothing to sums,
    # padded rows/cols produce zeros (eps clamp keeps rsqrt finite) and are sliced off.
    x_p = jnp.pad(x, ((0, n_p - n), (0, k_p - k_dim)))
    w_p = jnp.pad(weight, ((0, k_p - k_dim), (0, m_p - m_out)))
    inv_wn_p = jnp.pad(inv_wn, ((0, 0), (0, m_p - m_out)))

    grid = (m_p // tn, n_p // tm, k_p // tk)  # (j, i, k): reduction last

    out_p = pl.pallas_call(
        _normed_linear_kernel,
        out_shape=jax.ShapeDtypeStruct((n_p, m_p), out_dtype),
        grid_spec=pltpu.PrefetchScalarGridSpec(
            num_scalar_prefetch=0,
            grid=grid,
            in_specs=[
                pl.BlockSpec((tm, tk), lambda j, i, k: (i, k)),   # x
                pl.BlockSpec((tk, tn), lambda j, i, k: (k, j)),   # W
                pl.BlockSpec((1, tn), lambda j, i, k: (0, j)),    # 1/||W_col||
            ],
            out_specs=pl.BlockSpec((tm, tn), lambda j, i, k: (i, j)),
            scratch_shapes=[
                pltpu.VMEM((tm, tn), jnp.float32),  # f32 accumulator
                pltpu.VMEM((tm, 1), jnp.float32),   # running sum(x^2) per row
            ],
        ),
        compiler_params=pltpu.CompilerParams(
            # M/N tiles shard across cores (megacore / 2-TC v7x); K is the carried reduction.
            dimension_semantics=("parallel", "parallel", "arbitrary"),
        ),
    )(x_p, w_p, inv_wn_p)

    return out_p[:n, :m_out]


def init_normed_linear_weight(key, in_features, out_features):
    """Deterministic re-implementation of the torch init:
    uniform_(-1,1).renorm_(2, 1, 1e-5).mul_(1e5)  -> each column ~ unit L2 norm."""
    w = jax.random.uniform(
        key, (in_features, out_features), dtype=jnp.float32, minval=-1.0, maxval=1.0
    )
    col_norm = jnp.sqrt(jnp.sum(w * w, axis=0, keepdims=True))
    maxnorm = 1e-5
    scale = jnp.where(col_norm > maxnorm, maxnorm / (col_norm + 1e-7), 1.0)
    return w * scale * 1e5


def _reference(x, weight):
    xf = x.astype(jnp.float32)
    wf = weight.astype(jnp.float32)
    xn = xf / jnp.maximum(jnp.sqrt(jnp.sum(xf * xf, axis=1, keepdims=True)), _EPS)
    wn = wf / jnp.maximum(jnp.sqrt(jnp.sum(wf * wf, axis=0, keepdims=True)), _EPS)
    return _SCALE * (xn @ wn)


if __name__ == "__main__":
    key = jax.random.PRNGKey(0)
    k_x, k_w = jax.random.split(key)

    batch = 8
    in_features = 32
    out_features = 16

    x = jax.random.normal(k_x, (batch, in_features), dtype=jnp.float32)
    weight = init_normed_linear_weight(k_w, in_features, out_features)

    out = normed_linear(x, weight)
    out = jax.block_until_ready(out)

    ref = _reference(x, weight)
    assert out.shape == (batch, out_features)
    assert out.dtype == x.dtype
    assert jnp.allclose(out.astype(jnp.float32), ref, atol=1e-4, rtol=1e-4), "mismatch vs reference"

    print("KERNEL_OK")
</pallas_src>

<mosaic_0001>
module attributes {stable_mosaic.version = 11 : i64} {
  func.func @_normed_linear_kernel(%arg0: i32, %arg1: i32, %arg2: i32, %arg3: memref<8x128xf32, #tpu.memory_space<vmem>>, %arg4: memref<128x128xf32, #tpu.memory_space<vmem>>, %arg5: memref<1x128xf32, #tpu.memory_space<vmem>>, %arg6: memref<8x128xf32, #tpu.memory_space<vmem>>, %arg7: memref<8x128xf32, #tpu.memory_space<vmem>>, %arg8: memref<8x1xf32, #tpu.memory_space<vmem>>) attributes {dimension_semantics = [#tpu.dimension_semantics<parallel>, #tpu.dimension_semantics<parallel>, #tpu.dimension_semantics<arbitrary>], iteration_bounds = array<i64: 1, 1, 1>, scalar_prefetch = 0 : i64, scratch_operands = 2 : i64, tpu.core_type = #tpu.core_type<tc>, window_params = [{transform_indices = @transform_0, window_bounds = array<i64: 8, 128>}, {transform_indices = @transform_1, window_bounds = array<i64: 128, 128>}, {transform_indices = @transform_2, window_bounds = array<i64: 1, 128>}, {transform_indices = @transform_3, window_bounds = array<i64: 8, 128>}]} {
    %c0_i32 = arith.constant 0 : i32
    %0 = arith.cmpi eq, %arg2, %c0_i32 : i32
    %1 = arith.extui %0 : i1 to i32
    %c0_i32_0 = arith.constant 0 : i32
    %2 = arith.cmpi ne, %1, %c0_i32_0 : i32
    scf.if %2 {
      %cst_15 = arith.constant 0.000000e+00 : f32
      %18 = vector.broadcast %cst_15 : f32 to vector<8x128xf32>
      %c0_16 = arith.constant 0 : index
      %c0_17 = arith.constant 0 : index
      %19 = vector.load %arg7[%c0_16, %c0_17] : memref<8x128xf32, #tpu.memory_space<vmem>>, vector<8x128xf32>
      tpu.vector_store %arg7[%c0_16, %c0_17], %18 {strides = array<i32>} : memref<8x128xf32, #tpu.memory_space<vmem>>, vector<8x128xf32>,
      %cst_18 = arith.constant 0.000000e+00 : f32
      %20 = vector.broadcast %cst_18 : f32 to vector<8x1xf32>
      %c0_19 = arith.constant 0 : index
      %c0_20 = arith.constant 0 : index
      %21 = vector.load %arg8[%c0_19, %c0_20] : memref<8x1xf32, #tpu.memory_space<vmem>>, vector<8x1xf32>
      tpu.vector_store %arg8[%c0_19, %c0_20], %20 {strides = array<i32>} : memref<8x1xf32, #tpu.memory_space<vmem>>, vector<8x1xf32>,
    } else {
    }
    %c0 = arith.constant 0 : index
    %c0_1 = arith.constant 0 : index
    %3 = vector.load %arg3[%c0, %c0_1] : memref<8x128xf32, #tpu.memory_space<vmem>>, vector<8x128xf32>
    %c0_2 = arith.constant 0 : index
    %c0_3 = arith.constant 0 : index
    %4 = vector.load %arg7[%c0_2, %c0_3] : memref<8x128xf32, #tpu.memory_space<vmem>>, vector<8x128xf32>
    %c0_4 = arith.constant 0 : index
    %c0_5 = arith.constant 0 : index
    %5 = vector.load %arg4[%c0_4, %c0_5] : memref<128x128xf32, #tpu.memory_space<vmem>>, vector<128x128xf32>
    %cst = arith.constant dense<0.000000e+00> : vector<8x128xf32>
    %6 = tpu.matmul %3, %5, %cst {dimension_numbers = #tpu.dot_dimension_numbers<[1], [0], [0], [1], [0, 0, 1, 1], [], []>} : vector<8x128xf32>, vector<128x128xf32>, vector<8x128xf32> -> vector<8x128xf32>
    %7 = arith.addf %4, %6 : vector<8x128xf32>
    %c0_6 = arith.constant 0 : index
    %c0_7 = arith.constant 0 : index
    %8 = vector.load %arg7[%c0_6, %c0_7] : memref<8x128xf32, #tpu.memory_space<vmem>>, vector<8x128xf32>
    tpu.vector_store %arg7[%c0_6, %c0_7], %7 {strides = array<i32>} : memref<8x128xf32, #tpu.memory_space<vmem>>, vector<8x128xf32>,
    %c0_8 = arith.constant 0 : index
    %c0_9 = arith.constant 0 : index
    %9 = vector.load %arg8[%c0_8, %c0_9] : memref<8x1xf32, #tpu.memory_space<vmem>>, vector<8x1xf32>
    %10 = arith.mulf %3, %3 : vector<8x128xf32>
    %cst_10 = arith.constant dense<0.000000e+00> : vector<8xf32>
    %11 = vector.multi_reduction <add>, %10, %cst_10 [1] : vector<8x128xf32> to vector<8xf32>
    %12 = vector.shape_cast %11 : vector<8xf32> to vector<8x1xf32>
    %13 = arith.addf %9, %12 : vector<8x1xf32>
    %c0_11 = arith.constant 0 : index
    %c0_12 = arith.constant 0 : index
    %14 = vector.load %arg8[%c0_11, %c0_12] : memref<8x1xf32, #tpu.memory_space<vmem>>, vector<8x1xf32>
    tpu.vector_store %arg8[%c0_11, %c0_12], %13 {strides = array<i32>} : memref<8x1xf32, #tpu.memory_space<vmem>>, vector<8x1xf32>,
    %c0_i32_13 = arith.constant 0 : i32
    %15 = arith.cmpi eq, %arg2, %c0_i32_13 : i32
    %16 = arith.extui %15 : i1 to i32
    %c0_i32_14 = arith.constant 0 : i32
    %17 = arith.cmpi ne, %16, %c0_i32_14 : i32
    scf.if %17 {
      %c0_15 = arith.constant 0 : index
      %c0_16 = arith.constant 0 : index
      %18 = vector.load %arg8[%c0_15, %c0_16] : memref<8x1xf32, #tpu.memory_space<vmem>>, vector<8x1xf32>
      %cst_17 = arith.constant 1.000000e-24 : f32
      %19 = vector.broadcast %cst_17 : f32 to vector<8x1xf32>
      %20 = arith.maximumf %18, %19 : vector<8x1xf32>
      %21 = math.rsqrt %20 : vector<8x1xf32>
      %c0_18 = arith.constant 0 : index
      %c0_19 = arith.constant 0 : index
      %22 = vector.load %arg7[%c0_18, %c0_19] : memref<8x128xf32, #tpu.memory_space<vmem>>, vector<8x128xf32>
      %cst_20 = arith.constant 3.000000e+01 : f32
      %23 = vector.broadcast %cst_20 : f32 to vector<8x128xf32>
      %24 = arith.mulf %23, %22 : vector<8x128xf32>
      %25 = vector.broadcast %21 : vector<8x1xf32> to vector<8x128xf32>
      %26 = arith.mulf %24, %25 : vector<8x128xf32>
      %c0_21 = arith.constant 0 : index
      %c0_22 = arith.constant 0 : index
      %27 = vector.load %arg5[%c0_21, %c0_22] : memref<1x128xf32, #tpu.memory_space<vmem>>, vector<1x128xf32>
      %28 = vector.broadcast %27 : vector<1x128xf32> to vector<8x128xf32>
      %29 = arith.mulf %26, %28 : vector<8x128xf32>
      %c0_23 = arith.constant 0 : index
      %c0_24 = arith.constant 0 : index
      %30 = vector.load %arg6[%c0_23, %c0_24] : memref<8x128xf32, #tpu.memory_space<vmem>>, vector<8x128xf32>
      tpu.vector_store %arg6[%c0_23, %c0_24], %29 {strides = array<i32>} : memref<8x128xf32, #tpu.memory_space<vmem>>, vector<8x128xf32>,
    } else {
    }
    return
  }
  func.func @transform_0(%arg0: i32, %arg1: i32, %arg2: i32) -> (i32, i32) {
    %c0_i32 = arith.constant 0 : i32
    return %arg1, %arg2 : i32, i32
  }
  func.func @transform_1(%arg0: i32, %arg1: i32, %arg2: i32) -> (i32, i32) {
    %c0_i32 = arith.constant 0 : i32
    return %arg2, %arg0 : i32, i32
  }
  func.func @transform_2(%arg0: i32, %arg1: i32, %arg2: i32) -> (i32, i32) {
    %c0_i32 = arith.constant 0 : i32
    %c0_i32_0 = arith.constant 0 : i32
    return %c0_i32, %arg0 : i32, i32
  }
  func.func @transform_3(%arg0: i32, %arg1: i32, %arg2: i32) -> (i32, i32) {
    %c0_i32 = arith.constant 0 : i32
    return %arg1, %arg0 : i32, i32
  }
}

</mosaic_0001>

<bundles_post_ra>
// kernel: tpu_custom_call.1
= control target key start
LH: loop header
LB: loop body
LE: loop exit
PB: predicated region body
PF: predicated region fallthrough
CT: control target
= control target key end

     0   :  { %8 = vsyncpa [#allocation5], 0  ;;  %s276_s0 = inlined_call_operand.hbm [shape: f32[8,128], index: 0, kind: input, shape index: {}]   ;;  %s277_s1 = inlined_call_operand.hbm [shape: f32[128,128], index: 1, kind: input, shape index: {}]   ;;  %s278_s2 = inlined_call_operand.vmem [shape: f32[1,128], index: 2, kind: input, shape index: {}]   ;;  %s279_s3 = inlined_call_operand.hbm [shape: f32[8,128], index: 3, kind: output, shape index: {}]  }
   0x1   :  { %9 = vsyncpa [#allocation8], 0 }
   0x2   :  { %10 = vsyncpa [#allocation6], 0  ;;  %s16_s14 = sshll.u32 %s276_s0, 4  ;;  %s235_s15 = smov [#allocation4]   ;;  %s17_s14 = int_to_ptr.hbm [resolvable:$true] %s16_s14 }
   0x3   :  { %s18_s16 = sshll.u32 %s235_s15, 4  ;;  %s26_s19 = sshll.u32 %s277_s1, 4  ;;  %s19_s16 = int_to_ptr.vmem [resolvable:$true] %s18_s16  ;;  %s27_s19 = int_to_ptr.hbm [resolvable:$true] %s26_s19 }
   0x4   :  { %21 = dma.hbm_to_vmem [thread:$0]  %s17_s14, 128, %s19_s16, [#allocation5]  }
   0x5   :  { %s236_s20 = smov [#allocation7]   ;;  %s237_s22 = smov 128  }
   0x6   :  { %s28_s21 = sshll.u32 %s236_s20, 4  ;;  %s238_s23 = smov 8   ;;  %s29_s21 = int_to_ptr.vmem [resolvable:$true] %s28_s21 }
   0x7   :  { %34 = dma.hbm_to_vmem [thread:$0]  %s27_s19, 2048, %s29_s21, [#allocation8], %s237_s22, %s237_s22, %s238_s23  }
   0x8   :  { %229 = dma.done.wait [#allocation5], 128  }
   0x9   :  { %230 = vsyncadd [#allocation5], 4294967168 }
   0xa   :  { %231 = dma.done.wait [#allocation8], 2048  }
   0xb   :  { %232 = vsyncadd [#allocation8], 4294965248  ;;  %vm50_vm0 = vcmask 7168   ;;  %v239_v0 = vmov 0.0   ;;  %v52_v1 = vld [vmem:[#allocation4] sm:$0xff]  ;;  %v68_v3 = vld [vmem:[#allocation7 + $0x70] sm:$0xff] }
   0xc   :  { %51 = vst.msk [vmem:[#allocation3] sm:$0xff] %vm50_vm0, %v239_v0  ;;  %v69_v2 = vld [vmem:[#allocation7 + $0x78] sm:$0xff]  ;;  %v93_v4 = vmul.f32 %v52_v1, %v52_v1  ;;  %v67_v5 = vld [vmem:[#allocation7 + $0x68] sm:$0xff]  ;;  %v66_v6 = vld [vmem:[#allocation7 + $0x60] sm:$0xff]  ;;  %v240_v14 = vmov 0   ;;  %s241_s24 = smov [#allocation9]  }
   0xd   :  { %70 = vmatpush.msra.mxu0 %v69_v2  ;;  %v65_v7 = vld [vmem:[#allocation7 + $0x58] sm:$0xff]  ;;  %v64_v8 = vld [vmem:[#allocation7 + $0x50] sm:$0xff]  ;;  %v63_v9 = vld [vmem:[#allocation7 + $0x48] sm:$0xff]  ;;  %153 = vset.pattern.permute.xlu0 %v240_v14  ;;  %s133_s25 = sshll.u32 %s241_s24, 4  ;;  %s135_s28 = sshll.u32 %s279_s3, 4  ;;  %s134_s25 = int_to_ptr.vmem [resolvable:$true] %s133_s25  ;;  %s136_s28 = int_to_ptr.hbm [resolvable:$true] %s135_s28 }
   0xe   :  { %94 = vadd.xlane.f32.xlu0 %v93_v4  ;;  %v62_v10 = vld [vmem:[#allocation7 + $0x40] sm:$0xff]  ;;  %v61_v11 = vld [vmem:[#allocation7 + $0x38] sm:$0xff]  ;;  %v60_v12 = vld [vmem:[#allocation7 + $0x30] sm:$0xff] }
   0xf   :  { %71 = vmatpush.msra.mxu0 %v68_v3  ;;  %v59_v13 = vld [vmem:[#allocation7 + $0x28] sm:$0xff]  ;;  %v58_v15 = vld [vmem:[#allocation7 + $0x20] sm:$0xff]  ;;  %v57_v16 = vld [vmem:[#allocation7 + $0x18] sm:$0xff] }
  0x10   :  { %v56_v17 = vld [vmem:[#allocation7 + $0x10] sm:$0xff]  ;;  %v55_v18 = vld [vmem:[#allocation7 + $0x8] sm:$0xff]  ;;  %v54_v19 = vld [vmem:[#allocation7] sm:$0xff] }
  0x11   :  { %72 = vmatpush.msra.mxu0 %v67_v5  ;;  %v154_v34 = vld [vmem:[%s278_s2] ss:$0 sm:$0xff] }
  0x13   :  { %73 = vmatpush.msra.mxu0 %v66_v6  ;;  %v92_v20 = vld [vmem:[#allocation3] sm:$0xff] }
  0x15   :  { %74 = vmatpush.msra.mxu0 %v65_v7 }
  0x17   :  { %75 = vmatpush.msra.mxu0 %v64_v8 }
  0x19   :  { %76 = vmatpush.msra.mxu0 %v63_v9 }
  0x1b   :  { %77 = vmatpush.msra.mxu0 %v62_v10 }
  0x1d   :  { %78 = vmatpush.msra.mxu0 %v61_v11 }
  0x1f   :  { %79 = vmatpush.msra.mxu0 %v60_v12 }
  0x21   :  { %80 = vmatpush.msra.mxu0 %v59_v13 }
  0x23   :  { %81 = vmatpush.msra.mxu0 %v58_v15 }
  0x25   :  { %82 = vmatpush.msra.mxu0 %v57_v16 }
  0x27   :  { %83 = vmatpush.msra.mxu0 %v56_v17 }
  0x29   :  { %84 = vmatpush.msra.mxu0 %v55_v18 }
  0x2b   :  { %85 = vmatpush.msra.mxu0 %v54_v19 }
  0x2c   :  { %86 = vmatmul.f32.vlgmr.msra.gmra.mxu0 %v52_v1 }
  0x81   :  { %v95_v21 = vpop.xlane.xlu0 %94 }
  0x82   :  { %v96_v22 = vadd.f32 %v95_v21, %v92_v20 }
  0x84   :  { %98 = vst.msk [vmem:[#allocation3] sm:$0xff] %vm50_vm0, %v96_v22 }
  0x8b   :  { %v102_v23 = vld [vmem:[#allocation3] sm:$0xff] }
  0x8c   :  { %v103_v24 = vmax.f32 %v102_v23, 1e-24 }
  0x8e   :  { %155 = vrsqrt.f32 %v103_v24  ;;  %vm110_vm2 = vweird.f32 %v103_v24 }
  0x94   :  { %v156_v25 = vpop.eup %155 }
  0x95   :  { %v105_v26 = vmul.f32 %v156_v25, %v103_v24  ;;  %vm111_vm1 = vweird.f32 %v156_v25 }
  0x96   :  { %vm112_vm3 = vmor %vm110_vm2, %vm111_vm1 }
  0x97   :  { %v106_v27 = vmul.f32 %v156_v25, %v105_v26 }
  0x99   :  { %v107_v28 = vmul.f32 0.5, %v106_v27 }
  0x9b   :  { %v108_v29 = vsub.f32 1.5, %v107_v28 }
  0x9d   :  { %v109_v30 = vmul.f32 %v156_v25, %v108_v29 }
  0x9f   :  { %v113_v31 = vsel %vm112_vm3, %v156_v25, %v109_v30 }
  0xa0   :  { %118 = vperm.xlu0 %153, %v113_v31  }
  0xa9   :  { %v87_v32 = vpop.f32.mrf.mxu0 }
  0xaa   :  { %v115_v33 = vmul.f32 30.0, %v87_v32 }
 0x112   :  { %v119_v35 = vpop.permute.xlu0 %118 }
 0x113   :  { %v121_v36 = vmul.f32 %v119_v35, %v115_v33 }
 0x115   :  { %v126_v37 = vmul.f32 %v154_v34, %v121_v36 }
 0x117   :  { %127 = vst [vmem:[#allocation9] sm:$0xff] %v126_v37 }
 0x118   :  { %138 = dma.vmem_to_hbm [thread:$0]  %s134_s25, 128, %s136_s28, [#allocation6]  }
 0x119   :  { %233 = dma.done.wait [#allocation6], 128  }
 0x11a   :  { %234 = vsyncadd [#allocation6], 4294967168 }
 0x11b   :  { %143 = vsyncpa [#allocation5], 1 }
 0x11c   :  { %144 = vsyncpa [#allocation8], 1 }
 0x11d   :  { %145 = vsyncpa [#allocation6], 1 }

</bundles_post_ra>
